<compile_context>
chip_gen: v7x
topology: tpu7x:2x2x1
jax: 0.10.0
libtpu: 0.0.40
codegen_flags: <defaults>
</compile_context>

<pallas_src>
import functools

import jax
import jax.numpy as jnp
from jax.experimental import pallas as pl
from jax.experimental.pallas import tpu as pltpu


def _round_up(x, m):
    return ((x + m - 1) // m) * m


def _default_vmem_limit():
    # ~7/8 of physical VMEM: ~112 MiB on v5e/v6e, ~56 MiB on v7x.
    try:
        info = pltpu.get_tpu_info()
        cap = getattr(info, "vmem_capacity_bytes", None)
        if cap:
            return int(min(cap * 7 // 8, 128 * 1024 * 1024))
    except Exception:
        pass
    return 48 * 1024 * 1024


_VMEM_LIMIT = _default_vmem_limit()


def _vmem_spec():
    return pl.BlockSpec(memory_space=pltpu.MemorySpace.VMEM)


def _pick_tm(m8, gn, prefer_divisor=False):
    """Pick an M-tile: large (up to 1024), <=12.5% row-padding waste, and split
    so gm*gn >= 2 when possible (v7x dual-TC)."""
    tm = m8
    for c in (1024, 512, 256, 128, 64, 32, 16, 8):
        if c > m8:
            continue
        if prefer_divisor and m8 % c != 0:
            continue
        if (_round_up(m8, c) - m8) * 8 <= m8:
            tm = c
            break
    if gn == 1 and _round_up(m8, tm) == tm and tm >= 16 and tm % 16 == 0:
        tm //= 2
    return tm


# ----------------------------------------------------------------------------
# Pallas kernels
# ----------------------------------------------------------------------------
def _mm_bias_act_kernel(x_ref, w_ref, b_ref, o_ref, acc_ref, *, act, slope):
    """Tiled matmul (bf16 in, f32 acc) + bias + activation; bf16/f32 store."""
    k = pl.program_id(2)

    @pl.when(k == 0)
    def _():
        acc_ref[...] = jnp.zeros_like(acc_ref)

    acc_ref[...] += jnp.dot(x_ref[...], w_ref[...],
                            preferred_element_type=jnp.float32)

    @pl.when(k == pl.num_programs(2) - 1)
    def _():
        y = acc_ref[...] + b_ref[...]
        if act == "lrelu":
            y = jnp.maximum(y, slope * y)
        elif act == "relu":
            y = jnp.maximum(y, 0.0)
        o_ref[...] = y.astype(o_ref.dtype)


def _mm_stats_kernel(x_ref, w_ref, o_ref, stats_ref, acc_ref):
    """Tiled matmul + per-(M-tile, channel-tile) partial sum / sumsq (BN phase 1).

    grid = (gm, gn, gk), all of (gm, gn) parallel (both v7x TCs get work).
    Stats are computed from the f32 accumulator; y is stored in bf16.
    Padded M rows are exactly zero (BN convs have no bias) so they contribute
    zero; the normalize phase divides by the *true* M.
    """
    k = pl.program_id(2)

    @pl.when(k == 0)
    def _():
        acc_ref[...] = jnp.zeros_like(acc_ref)

    acc_ref[...] += jnp.dot(x_ref[...], w_ref[...],
                            preferred_element_type=jnp.float32)

    @pl.when(k == pl.num_programs(2) - 1)
    def _():
        y = acc_ref[...]
        o_ref[...] = y.astype(o_ref.dtype)
        s = jnp.sum(y, axis=0, keepdims=True)
        ss = jnp.sum(y * y, axis=0, keepdims=True)
        stats_ref[...] = jnp.concatenate([s, ss], axis=0).reshape(
            1, 2, s.shape[-1])


def _bn_act_kernel(y_ref, stats_ref, g_ref, be_ref, o_ref,
                   *, inv_m, eps, act, slope):
    """BN phase 2: reduce partial stats, normalize, gamma/beta, activation."""
    tot = jnp.sum(stats_ref[...], axis=0)          # (2, tn): [sum; sumsq]
    mean = tot[0:1, :] * inv_m
    var = tot[1:2, :] * inv_m - mean * mean        # biased (training-mode) var
    y = (y_ref[...].astype(jnp.float32) - mean) * jax.lax.rsqrt(var + eps)
    y = y * g_ref[...] + be_ref[...]
    if act == "lrelu":
        y = jnp.maximum(y, slope * y)
    elif act == "relu":
        y = jnp.maximum(y, 0.0)
    o_ref[...] = y.astype(o_ref.dtype)


def _absdiff_mean_kernel(x_ref, y_ref, o_ref, *, inv_n):
    """Grid-accumulated mean(|x - y|) over lane-dense (rows, 128) tiles."""
    i = pl.program_id(0)

    @pl.when(i == 0)
    def _():
        o_ref[...] = jnp.zeros_like(o_ref)

    part = jnp.sum(jnp.abs(x_ref[...] - y_ref[...]), axis=(0, 1), keepdims=True)
    o_ref[...] = o_ref[...] + part

    @pl.when(i == pl.num_programs(0) - 1)
    def _():
        o_ref[...] = o_ref[...] * inv_n


def _lpips_dist_kernel(f0_ref, f1_ref, lin_ref, o_ref, *, inv_hw):
    """Per-sample LPIPS layer distance, streamed over HW tiles (bf16 features).

    grid = (N, HW//t_hw); per-sample (1,1,1) accumulator resident across HW.
    """
    h = pl.program_id(1)

    @pl.when(h == 0)
    def _():
        o_ref[...] = jnp.zeros_like(o_ref)

    f0 = f0_ref[...].astype(jnp.float32)            # (1, t_hw, C_pad)
    f1 = f1_ref[...].astype(jnp.float32)
    # Torch-LPIPS normalization: x / (sqrt(sum_sq) + 1e-10).
    n0 = f0 / (jnp.sqrt(jnp.sum(f0 * f0, axis=-1, keepdims=True)) + 1e-10)
    n1 = f1 / (jnp.sqrt(jnp.sum(f1 * f1, axis=-1, keepdims=True)) + 1e-10)
    d = (n0 - n1) ** 2
    v = jnp.sum(d * lin_ref[...], axis=-1)          # lin zero on padded lanes
    o_ref[...] += jnp.sum(v).reshape(1, 1, 1)

    @pl.when(h == pl.num_programs(1) - 1)
    def _():
        o_ref[...] = o_ref[...] * inv_hw


def _g_loss_kernel(lf_ref, o_ref):
    o_ref[...] = -jnp.mean(lf_ref[...], axis=(0, 1), keepdims=True)


def _disc_loss_kernel(lr_ref, lf_ref, d_ref, mr_ref, mf_ref, *, loss_type):
    lr = lr_ref[...]
    lf = lf_ref[...]
    if loss_type == "hinge":
        lreal = jnp.mean(jnp.maximum(1.0 - lr, 0.0), axis=(0, 1), keepdims=True)
        lfake = jnp.mean(jnp.maximum(1.0 + lf, 0.0), axis=(0, 1), keepdims=True)
    else:  # vanilla: softplus
        lreal = jnp.mean(jnp.logaddexp(0.0, -lr), axis=(0, 1), keepdims=True)
        lfake = jnp.mean(jnp.logaddexp(0.0, lf), axis=(0, 1), keepdims=True)
    d_ref[...] = 0.5 * (lreal + lfake)
    mr_ref[...] = jnp.mean(lr, axis=(0, 1), keepdims=True)
    mf_ref[...] = jnp.mean(lf, axis=(0, 1), keepdims=True)


# ----------------------------------------------------------------------------
# Pallas-backed building blocks
# ----------------------------------------------------------------------------
def conv2d_pallas(x, w, *, b=None, gamma=None, beta=None, stride=1, padding=1,
                  act=None, slope=0.2, eps=1e-5, out_dtype=jnp.bfloat16,
                  return_padded=False):
    """NHWC conv = bf16 im2col (glue) + tiled/pipelined Pallas matmul (+BN/act)."""
    N, H, W_, Cin = x.shape
    KH, KW, _, Cout = w.shape
    x = x.astype(jnp.bfloat16)
    xp = jnp.pad(x, ((0, 0), (padding, padding), (padding, padding), (0, 0)))
    Hp, Wp = H + 2 * padding, W_ + 2 * padding
    Ho = (Hp - KH) // stride + 1
    Wo = (Wp - KW) // stride + 1

    # TODO(synk): im2col still happens on the XLA side (now in bf16, halving
    # its HBM traffic); a fully in-kernel per-tap accumulation with strided
    # pl.ds reads of the padded NHWC input would remove the remaining
    # KH*KW-fold input-read inflation at large image sizes.
    cols = []
    for i in range(KH):
        for j in range(KW):
            sl = jax.lax.slice(
                xp, (0, i, j, 0),
                (N, i + (Ho - 1) * stride + 1, j + (Wo - 1) * stride + 1, Cin),
                (1, stride, stride, 1))
            cols.append(sl)                              # (N, Ho, Wo, Cin) bf16
    patches = jnp.concatenate(cols, axis=-1).reshape(N * Ho * Wo, KH * KW * Cin)
    M, K = patches.shape

    # --- lane/MXU friendly padding; bf16 operands, f32 accumulation ---------
    C_pad = _round_up(Cout, 128)
    tn = 256 if C_pad % 256 == 0 else 128                # feed full 256-wide MXU
    K128 = _round_up(K, 128)
    if K128 >= 1024:
        tk = 1024
    elif K128 >= 512:
        tk = 512
    else:
        tk = K128
    K_pad = _round_up(K128, tk)
    M8 = _round_up(M, 8)
    gn = C_pad // tn
    tm = _pick_tm(M8, gn, prefer_divisor=return_padded)
    M_pad = _round_up(M8, tm)
    gm, gk = M_pad // tm, K_pad // tk

    patches_p = jnp.pad(patches, ((0, M_pad - M), (0, K_pad - K)))
    w_p = jnp.pad(w.reshape(K, Cout).astype(jnp.bfloat16),
                  ((0, K_pad - K), (0, C_pad - Cout)))
    use_bn = gamma is not None

    if not use_bn:
        b_full = b if b is not None else jnp.zeros((Cout,), jnp.float32)
        b_p = jnp.pad(b_full.astype(jnp.float32), (0, C_pad - Cout)
                      ).reshape(1, C_pad)
        kernel = functools.partial(_mm_bias_act_kernel, act=act, slope=slope)
        y = pl.pallas_call(
            kernel,
            out_shape=jax.ShapeDtypeStruct((M_pad, C_pad), out_dtype),
            grid=(gm, gn, gk),
            in_specs=[pl.BlockSpec((tm, tk), lambda i, j, k: (i, k)),
                      pl.BlockSpec((tk, tn), lambda i, j, k: (k, j)),
                      pl.BlockSpec((1, tn), lambda i, j, k: (0, j))],
            out_specs=pl.BlockSpec((tm, tn), lambda i, j, k: (i, j)),
            scratch_shapes=[pltpu.VMEM((tm, tn), jnp.float32)],
            compiler_params=pltpu.CompilerParams(
                dimension_semantics=("parallel", "parallel", "arbitrary"),
                vmem_limit_bytes=_VMEM_LIMIT),
        )(patches_p, w_p, b_p)
    else:
        assert b is None, "BN conv layers are bias-free (padded-row correctness)"
        # Phase 1: matmul + per-M-tile partial stats (parallel M axis).
        y_raw, pstats = pl.pallas_call(
            _mm_stats_kernel,
            out_shape=(jax.ShapeDtypeStruct((M_pad, C_pad), jnp.bfloat16),
                       jax.ShapeDtypeStruct((gm, 2, C_pad), jnp.float32)),
            grid=(gm, gn, gk),
            in_specs=[pl.BlockSpec((tm, tk), lambda i, j, k: (i, k)),
                      pl.BlockSpec((tk, tn), lambda i, j, k: (k, j))],
            out_specs=(pl.BlockSpec((tm, tn), lambda i, j, k: (i, j)),
                       pl.BlockSpec((1, 2, tn), lambda i, j, k: (i, 0, j))),
            scratch_shapes=[pltpu.VMEM((tm, tn), jnp.float32)],
            compiler_params=pltpu.CompilerParams(
                dimension_semantics=("parallel", "parallel", "arbitrary"),
                vmem_limit_bytes=_VMEM_LIMIT),
        )(patches_p, w_p)

        g_p = jnp.pad(gamma.astype(jnp.float32), (0, C_pad - Cout)
                      ).reshape(1, C_pad)
        be_p = jnp.pad(beta.astype(jnp.float32), (0, C_pad - Cout)
                       ).reshape(1, C_pad)
        bn_kernel = functools.partial(_bn_act_kernel, inv_m=1.0 / float(M),
                                      eps=eps, act=act, slope=slope)
        # Phase 2: reduce partial stats + normalize + gamma/beta + activation.
        y = pl.pallas_call(
            bn_kernel,
            out_shape=jax.ShapeDtypeStruct((M_pad, C_pad), out_dtype),
            grid=(gm, gn),
            in_specs=[pl.BlockSpec((tm, tn), lambda i, j: (i, j)),
                      pl.BlockSpec((gm, 2, tn), lambda i, j: (0, 0, j)),
                      pl.BlockSpec((1, tn), lambda i, j: (0, j)),
                      pl.BlockSpec((1, tn), lambda i, j: (0, j))],
            out_specs=pl.BlockSpec((tm, tn), lambda i, j: (i, j)),
            compiler_params=pltpu.CompilerParams(
                dimension_semantics=("parallel", "parallel"),
                vmem_limit_bytes=_VMEM_LIMIT),
        )(y_raw, pstats, g_p, be_p)

    y_nhwc = y[:M, :Cout].reshape(N, Ho, Wo, Cout)
    if return_padded:
        return y_nhwc, y          # y: (M_pad, C_pad) lane-dense, out_dtype
    return y_nhwc


def absdiff_mean_pallas(x, y):
    """mean(|x - y|), lane-dense (rows, 128) layout, tiled 1-D grid."""
    total = x.size
    xf = x.reshape(-1).astype(jnp.float32)
    yf = y.reshape(-1).astype(jnp.float32)
    lane = 128
    rows = -(-total // lane)
    rows8 = _round_up(rows, 8)
    tile = min(2048, rows8)
    rows_pad = _round_up(rows8, tile)
    n_pad = rows_pad * lane
    xf = jnp.pad(xf, (0, n_pad - total)).reshape(rows_pad, lane)
    yf = jnp.pad(yf, (0, n_pad - total)).reshape(rows_pad, lane)

    kernel = functools.partial(_absdiff_mean_kernel, inv_n=1.0 / float(total))
    out = pl.pallas_call(
        kernel,
        out_shape=jax.ShapeDtypeStruct((1, 1), jnp.float32),
        grid=(rows_pad // tile,),
        in_specs=[pl.BlockSpec((tile, lane), lambda i: (i, 0)),
                  pl.BlockSpec((tile, lane), lambda i: (i, 0))],
        out_specs=pl.BlockSpec((1, 1), lambda i: (0, 0)),
        compiler_params=pltpu.CompilerParams(
            dimension_semantics=("arbitrary",),
            vmem_limit_bytes=_VMEM_LIMIT),
    )(xf, yf)
    return out[0, 0]


def lpips_layer_dist(feats, lin, N, HW):
    """Per-sample layer distance from lane-dense bf16 features (2N, HW, C_pad)."""
    twoN, _, C_pad = feats.shape
    t_hw = HW
    for cand in (2048, 1024, 512, 256, 128, 64, 32, 16, 8):
        if cand <= HW and HW % cand == 0:
            t_hw = cand
            break
    n_hw = HW // t_hw
    kernel = functools.partial(_lpips_dist_kernel, inv_hw=1.0 / float(HW))
    return pl.pallas_call(
        kernel,
        out_shape=jax.ShapeDtypeStruct((N, 1, 1), jnp.float32),
        grid=(N, n_hw),
        in_specs=[pl.BlockSpec((1, t_hw, C_pad), lambda n, h: (n, h, 0)),
                  pl.BlockSpec((1, t_hw, C_pad), lambda n, h: (n + N, h, 0)),
                  pl.BlockSpec((1, C_pad), lambda n, h: (0, 0))],
        out_specs=pl.BlockSpec((1, 1, 1), lambda n, h: (n, 0, 0)),
        compiler_params=pltpu.CompilerParams(
            dimension_semantics=("parallel", "arbitrary"),
            vmem_limit_bytes=_VMEM_LIMIT),
    )(feats, feats, lin)


# ----------------------------------------------------------------------------
# Sub-modules: NLayerDiscriminator and (synthetic) LPIPS
# ----------------------------------------------------------------------------
def discriminator_forward(p, x_nhwc):
    """NLayerDiscriminator(n_layers=3, BatchNorm, kw=4) -> patch logits (N,h,w,1)."""
    h = conv2d_pallas(x_nhwc, p["d0_w"], b=p["d0_b"], stride=2, padding=1,
                      act="lrelu", out_dtype=jnp.bfloat16)
    h = conv2d_pallas(h, p["d1_w"], gamma=p["d1_g"], beta=p["d1_be"],
                      stride=2, padding=1, act="lrelu", out_dtype=jnp.bfloat16)
    h = conv2d_pallas(h, p["d2_w"], gamma=p["d2_g"], beta=p["d2_be"],
                      stride=2, padding=1, act="lrelu", out_dtype=jnp.bfloat16)
    h = conv2d_pallas(h, p["d3_w"], gamma=p["d3_g"], beta=p["d3_be"],
                      stride=1, padding=1, act="lrelu", out_dtype=jnp.bfloat16)
    h = conv2d_pallas(h, p["d4_w"], b=p["d4_b"], stride=1, padding=1, act=None,
                      out_dtype=jnp.float32)
    return h


def lpips_forward(p, x_nhwc, y_nhwc):
    """LPIPS-style perceptual distance, per-sample (N, 1, 1).

    # TODO(synk): real LPIPS uses a pretrained VGG16; a small deterministic
    # conv feature stack stands in (no checkpoint loading). The LPIPS math is
    # kept: scaling layer -> features -> channel-unit-normalize -> sq diff ->
    # positive 1x1 lin -> spatial average -> sum over layers.
    Inputs and reconstructions run the feature net as ONE batched pass; the
    distance kernel consumes the lane-dense (C_pad=128) conv output directly.
    """
    shift = jnp.array([-0.030, -0.088, -0.188], jnp.float32)
    scale = jnp.array([0.458, 0.448, 0.450], jnp.float32)
    N = x_nhwc.shape[0]
    h = jnp.concatenate([(x_nhwc - shift) / scale,
                         (y_nhwc - shift) / scale], axis=0).astype(jnp.bfloat16)

    total = None
    for i in range(3):
        stride = 1 if i == 0 else 2
        h, feats2d = conv2d_pallas(h, p[f"v{i}_w"], b=p[f"v{i}_b"],
                                   stride=stride, padding=1, act="relu",
                                   out_dtype=jnp.bfloat16, return_padded=True)
        twoN, Ho, Wo, C = h.shape
        C_pad = feats2d.shape[1]
        HW = Ho * Wo
        M = twoN * HW
        feats = feats2d[:M].reshape(twoN, HW, C_pad)   # no-op slice if M_pad == M
        lin = jnp.pad(p[f"lin{i}"].astype(jnp.float32),
                      (0, C_pad - C)).reshape(1, C_pad)
        d = lpips_layer_dist(feats, lin, N, HW)
        total = d if total is None else total + d
    return total                                        # (N, 1, 1)


# ----------------------------------------------------------------------------
# Parameter init (deterministic, weights_init-style)
# ----------------------------------------------------------------------------
def init_params(key, cfg):
    ndf = cfg["disc_ndf"]
    inc = cfg["disc_in_channels"]
    keys = iter(jax.random.split(key, 32))

    def nrm(shape, std=0.02, mean=0.0):
        return mean + std * jax.random.normal(next(keys), shape, jnp.float32)

    p = {}
    # NLayerDiscriminator (n_layers=3): conv weights HWIO, N(0, 0.02); BN N(1, 0.02).
    chans = [inc, ndf, ndf * 2, ndf * 4, ndf * 8]
    p["d0_w"] = nrm((4, 4, chans[0], chans[1]))
    p["d0_b"] = jnp.zeros((chans[1],), jnp.float32)
    for n in range(1, 4):   # BN layers (conv bias=False)
        p[f"d{n}_w"] = nrm((4, 4, chans[n], chans[n + 1]))
        p[f"d{n}_g"] = nrm((chans[n + 1],), std=0.02, mean=1.0)
        p[f"d{n}_be"] = jnp.zeros((chans[n + 1],), jnp.float32)
    p["d4_w"] = nrm((4, 4, chans[4], 1))
    p["d4_b"] = jnp.zeros((1,), jnp.float32)

    # Synthetic LPIPS feature net + positive 1x1 "lin" weights.
    vch = [3, 8, 16, 32]
    for i in range(3):
        p[f"v{i}_w"] = nrm((3, 3, vch[i], vch[i + 1]), std=0.1)
        p[f"v{i}_b"] = jnp.zeros((vch[i + 1],), jnp.float32)
        p[f"lin{i}"] = jnp.abs(nrm((vch[i + 1],), std=0.1))
    return p


# ----------------------------------------------------------------------------
# VQLPIPSWithDiscriminator.forward
# ----------------------------------------------------------------------------
def adopt_weight(weight, global_step, threshold=0, value=0.0):
    # NOTE: static Python comparison (matches the torch reference); use a
    # concrete int global_step, not a traced one.
    if global_step < threshold:
        weight = value
    return weight


def vq_lpips_with_discriminator_forward(params, cfg, codebook_loss, inputs_nchw,
                                        reconstructions_nchw, optimizer_idx,
                                        global_step, split="train"):
    # layout: public API is NCHW (PyTorch); kernels run NHWC.
    x = jnp.transpose(inputs_nchw, (0, 2, 3, 1)).astype(jnp.float32)
    xr = jnp.transpose(reconstructions_nchw, (0, 2, 3, 1)).astype(jnp.float32)
    N = x.shape[0]

    # rec_loss = |x - x_rec| ; nll_loss = mean(rec_loss + pw * p_loss_broadcast)
    abs_mean = absdiff_mean_pallas(x, xr)
    if cfg["perceptual_weight"] > 0:
        p_loss = lpips_forward(params, x, xr)          # (N, 1, 1) per-sample
    else:
        p_loss = jnp.zeros((N, 1, 1), jnp.float32)
    p_mean = jnp.mean(p_loss)                          # scalar glue
    nll_loss = abs_mean + cfg["perceptual_weight"] * p_mean
    rec_loss_mean = nll_loss                           # rec_loss.mean() == nll_loss

    disc_factor = adopt_weight(cfg["disc_factor"], global_step,
                               threshold=cfg["disc_start"])

    if optimizer_idx == 0:
        logits_fake = discriminator_forward(params, xr)          # (N, h, w, 1)
        lf2d = logits_fake.reshape(N, -1)
        g_loss = pl.pallas_call(
            _g_loss_kernel,
            out_shape=jax.ShapeDtypeStruct((1, 1), jnp.float32),
            in_specs=[_vmem_spec()],
            out_specs=_vmem_spec(),
        )(lf2d)[0, 0]

        # TODO(synk): calculate_adaptive_weight needs torch.autograd.grad w.r.t.
        # the decoder's last layer (not available in a forward-only kernel);
        # mirror the RuntimeError/except branch: d_weight = 0.0.
        d_weight = jnp.float32(0.0)

        loss = (nll_loss + d_weight * disc_factor * g_loss +
                cfg["codebook_weight"] * jnp.mean(codebook_loss))
        log = {
            f"{split}/total_loss": loss,
            f"{split}/quant_loss": jnp.mean(codebook_loss),
            f"{split}/nll_loss": nll_loss,
            f"{split}/rec_loss": rec_loss_mean,
            f"{split}/p_loss": p_mean,
            f"{split}/d_weight": d_weight,
            f"{split}/disc_factor": jnp.float32(disc_factor),
            f"{split}/g_loss": g_loss,
        }
        return loss, log

    if optimizer_idx == 1:
        # Real and fake share one batched discriminator pass (weights/im2col
        # DMA'd once, 2x M per layer -> better MXU + pipeline occupancy).
        logits = discriminator_forward(
            params, jnp.concatenate([x, xr], axis=0))            # (2N, h, w, 1)
        lr2d = logits[:N].reshape(N, -1)
        lf2d = logits[N:].reshape(N, -1)
        kernel = functools.partial(_disc_loss_kernel, loss_type=cfg["disc_loss"])
        d_core, mr, mf = pl.pallas_call(
            kernel,
            out_shape=(jax.ShapeDtypeStruct((1, 1), jnp.float32),
                       jax.ShapeDtypeStruct((1, 1), jnp.float32),
                       jax.ShapeDtypeStruct((1, 1), jnp.float32)),
            in_specs=[_vmem_spec(), _vmem_spec()],
            out_specs=(_vmem_spec(), _vmem_spec(), _vmem_spec()),
        )(lr2d, lf2d)
        d_loss = disc_factor * d_core[0, 0]
        log = {
            f"{split}/disc_loss": d_loss,
            f"{split}/logits_real": mr[0, 0],
            f"{split}/logits_fake": mf[0, 0],
        }
        return d_loss, log

    raise ValueError("optimizer_idx must be 0 or 1")


# ----------------------------------------------------------------------------
# main
# ----------------------------------------------------------------------------
if __name__ == "__main__":
    cfg = dict(
        disc_start=0, codebook_weight=1.0, pixelloss_weight=1.0,
        disc_num_layers=3, disc_in_channels=3, disc_factor=1.0, disc_weight=1.0,
        perceptual_weight=1.0, disc_ndf=32, disc_loss="hinge",
    )

    key = jax.random.PRNGKey(0)
    k_p, k_x, k_r = jax.random.split(key, 3)
    params = init_params(k_p, cfg)

    # spatial=32 so the default 3-layer PatchGAN (kw=4) yields valid 2x2 logits.
    N, C, H, W = 2, 3, 32, 32
    inputs = jax.random.normal(k_x, (N, C, H, W), jnp.float32)
    reconstructions = inputs + 0.1 * jax.random.normal(k_r, (N, C, H, W), jnp.float32)
    codebook_loss = jnp.float32(0.25)

    loss_g, log_g = vq_lpips_with_discriminator_forward(
        params, cfg, codebook_loss, inputs, reconstructions,
        optimizer_idx=0, global_step=10)
    loss_d, log_d = vq_lpips_with_discriminator_forward(
        params, cfg, codebook_loss, inputs, reconstructions,
        optimizer_idx=1, global_step=10)

    jax.block_until_ready((loss_g, log_g, loss_d, log_d))
    print("KERNEL_OK")
</pallas_src>

<mosaic_0001>
module attributes {stable_mosaic.version = 11 : i64} {
  func.func @_absdiff_mean_kernel(%arg0: i32, %arg1: memref<48x128xf32, #tpu.memory_space<vmem>>, %arg2: memref<48x128xf32, #tpu.memory_space<vmem>>, %arg3: memref<1x1xf32, #tpu.memory_space<vmem>>) attributes {dimension_semantics = [#tpu.dimension_semantics<arbitrary>], iteration_bounds = array<i64: 1>, scalar_prefetch = 0 : i64, scratch_operands = 0 : i64, tpu.core_type = #tpu.core_type<tc>, window_params = [{transform_indices = @transform_0, window_bounds = array<i64: 48, 128>}, {transform_indices = @transform_1, window_bounds = array<i64: 48, 128>}, {pipeline_mode = #tpu.pipeline_mode<synchronous>, transform_indices = @transform_2, window_bounds = array<i64: 1, 1>}]} {
    %c0_i32 = arith.constant 0 : i32
    %0 = arith.cmpi eq, %arg0, %c0_i32 : i32
    %1 = arith.extui %0 : i1 to i32
    %c0_i32_0 = arith.constant 0 : i32
    %2 = arith.cmpi ne, %1, %c0_i32_0 : i32
    scf.if %2 {
      %cst_10 = arith.constant 0.000000e+00 : f32
      %18 = vector.broadcast %cst_10 : f32 to vector<1x1xf32>
      %c0_11 = arith.constant 0 : index
      %c0_12 = arith.constant 0 : index
      %19 = vector.load %arg3[%c0_11, %c0_12] : memref<1x1xf32, #tpu.memory_space<vmem>>, vector<1x1xf32>
      tpu.vector_store %arg3[%c0_11, %c0_12], %18 {strides = array<i32>} : memref<1x1xf32, #tpu.memory_space<vmem>>, vector<1x1xf32>,
    } else {
    }
    %c0 = arith.constant 0 : index
    %c0_1 = arith.constant 0 : index
    %3 = vector.load %arg1[%c0, %c0_1] : memref<48x128xf32, #tpu.memory_space<vmem>>, vector<48x128xf32>
    %c0_2 = arith.constant 0 : index
    %c0_3 = arith.constant 0 : index
    %4 = vector.load %arg2[%c0_2, %c0_3] : memref<48x128xf32, #tpu.memory_space<vmem>>, vector<48x128xf32>
    %5 = arith.subf %3, %4 : vector<48x128xf32>
    %6 = math.absf %5 : vector<48x128xf32>
    %7 = vector.shape_cast %6 : vector<48x128xf32> to vector<1x48x128xf32>
    %cst = arith.constant dense<0.000000e+00> : vector<1xf32>
    %8 = vector.multi_reduction <add>, %7, %cst [1, 2] : vector<1x48x128xf32> to vector<1xf32>
    %9 = vector.shape_cast %8 : vector<1xf32> to vector<1x1x1xf32>
    %10 = vector.extract %9[0, 0, 0] : f32 from vector<1x1x1xf32>
    %11 = vector.broadcast %10 : f32 to vector<1x1xf32>
    %c0_4 = arith.constant 0 : index
    %c0_5 = arith.constant 0 : index
    %12 = vector.load %arg3[%c0_4, %c0_5] : memref<1x1xf32, #tpu.memory_space<vmem>>, vector<1x1xf32>
    %13 = arith.addf %12, %11 : vector<1x1xf32>
    %c0_6 = arith.constant 0 : index
    %c0_7 = arith.constant 0 : index
    %14 = vector.load %arg3[%c0_6, %c0_7] : memref<1x1xf32, #tpu.memory_space<vmem>>, vector<1x1xf32>
    tpu.vector_store %arg3[%c0_6, %c0_7], %13 {strides = array<i32>} : memref<1x1xf32, #tpu.memory_space<vmem>>, vector<1x1xf32>,
    %c0_i32_8 = arith.constant 0 : i32
    %15 = arith.cmpi eq, %arg0, %c0_i32_8 : i32
    %16 = arith.extui %15 : i1 to i32
    %c0_i32_9 = arith.constant 0 : i32
    %17 = arith.cmpi ne, %16, %c0_i32_9 : i32
    scf.if %17 {
      %c0_10 = arith.constant 0 : index
      %c0_11 = arith.constant 0 : index
      %18 = vector.load %arg3[%c0_10, %c0_11] : memref<1x1xf32, #tpu.memory_space<vmem>>, vector<1x1xf32>
      %cst_12 = arith.constant 1.62760422E-4 : f32
      %19 = vector.broadcast %cst_12 : f32 to vector<1x1xf32>
      %20 = arith.mulf %18, %19 : vector<1x1xf32>
      %c0_13 = arith.constant 0 : index
      %c0_14 = arith.constant 0 : index
      %21 = vector.load %arg3[%c0_13, %c0_14] : memref<1x1xf32, #tpu.memory_space<vmem>>, vector<1x1xf32>
      tpu.vector_store %arg3[%c0_13, %c0_14], %20 {strides = array<i32>} : memref<1x1xf32, #tpu.memory_space<vmem>>, vector<1x1xf32>,
    } else {
    }
    return
  }
  func.func @transform_0(%arg0: i32) -> (i32, i32) {
    %c0_i32 = arith.constant 0 : i32
    %c0_i32_0 = arith.constant 0 : i32
    return %arg0, %c0_i32 : i32, i32
  }
  func.func @transform_1(%arg0: i32) -> (i32, i32) {
    %c0_i32 = arith.constant 0 : i32
    %c0_i32_0 = arith.constant 0 : i32
    return %arg0, %c0_i32 : i32, i32
  }
  func.func @transform_2(%arg0: i32) -> (i32, i32) {
    %c0_i32 = arith.constant 0 : i32
    %c0_i32_0 = arith.constant 0 : i32
    %c0_i32_1 = arith.constant 0 : i32
    return %c0_i32, %c0_i32_0 : i32, i32
  }
}

</mosaic_0001>

<bundles_post_ra>
// kernel: tpu_custom_call.1
= control target key start
LH: loop header
LB: loop body
LE: loop exit
PB: predicated region body
PF: predicated region fallthrough
CT: control target
= control target key end

     0   :  { %7 = vsyncpa [#allocation3], 0  ;;  %s251_s0 = inlined_call_operand.hbm [shape: f32[48,128], index: 0, kind: input, shape index: {}]   ;;  %s252_s1 = inlined_call_operand.hbm [shape: f32[48,128], index: 1, kind: input, shape index: {}]   ;;  %s253_s2 = inlined_call_operand.hbm [shape: f32[1,1], index: 2, kind: output, shape index: {}]  }
   0x1   :  { %8 = vsyncpa [#allocation6], 0 }
   0x2   :  { %9 = vsyncpa [#allocation4], 0  ;;  %s191_s9 = smov [#allocation2]   ;;  %s119_s13 = scalar_lea.hbm %s251_s0, 768 }
   0x3   :  { %s15_s10 = sshll.u32 %s191_s9, 4  ;;  %p120_p0 = scmp.ne.s32.totalorder %s251_s0, %s119_s13  ;;  %s16_s10 = int_to_ptr.vmem [resolvable:$true] %s15_s10 }
   0x4   :  { %p123_p1 = scmp.lt.u32.totalorder %s119_s13, %s251_s0 }
   0x6   :  { %p125_p2 = pnand %p123_p1, %p120_p0 }
   0x8   :  { %128 = shalt.err (!%p125_p2)
}
   0x9   :  { %s129_s18 = scalar_lea.vmem %s16_s10, 768  ;;  %p134_p4 = scmp.lt.s32.totalorder %s16_s10, %s16_s10 }
   0xa   :  { %p130_p3 = scmp.ne.s32.totalorder %s16_s10, %s129_s18  ;;  %p135_p5 = scmp.lt.s32.totalorder %s129_s18, %s129_s18 }
   0xc   :  { %p136_p6 = por %p135_p5, %p134_p4 }
   0xe   :  { %p137_p7 = pnand %p136_p6, %p130_p3 }
  0x10   :  { %140 = shalt.err (!%p137_p7)
}
  0x11   :  { %s192_s19 = smov 128   ;;  %s193_s20 = smov 8  }
  0x12   :  { %21 = dma.hbm_to_vmem [thread:$0]  %s251_s0, 768, %s16_s10, [#allocation3], %s192_s19, %s192_s19, %s193_s20  }
  0x13   :  { %s194_s23 = smov [#allocation5]   ;;  %s141_s27 = scalar_lea.hbm %s252_s1, 768 }
  0x14   :  { %s27_s24 = sshll.u32 %s194_s23, 4  ;;  %p142_p8 = scmp.ne.s32.totalorder %s252_s1, %s141_s27  ;;  %s28_s24 = int_to_ptr.vmem [resolvable:$true] %s27_s24 }
  0x15   :  { %p145_p9 = scmp.lt.u32.totalorder %s141_s27, %s252_s1 }
  0x17   :  { %p147_p10 = pnand %p145_p9, %p142_p8 }
  0x19   :  { %150 = shalt.err (!%p147_p10)
}
  0x1a   :  { %s151_s4 = scalar_lea.vmem %s28_s24, 768  ;;  %p156_p12 = scmp.lt.s32.totalorder %s28_s24, %s28_s24 }
  0x1b   :  { %p152_p11 = scmp.ne.s32.totalorder %s28_s24, %s151_s4  ;;  %p157_p13 = scmp.lt.s32.totalorder %s151_s4, %s151_s4 }
  0x1d   :  { %p158_p0 = por %p157_p13, %p156_p12 }
  0x1f   :  { %p159_p1 = pnand %p158_p0, %p152_p11 }
  0x21   :  { %162 = shalt.err (!%p159_p1)
}
  0x22   :  { %33 = dma.hbm_to_vmem [thread:$0]  %s252_s1, 768, %s28_s24, [#allocation6], %s192_s19, %s192_s19, %s193_s20  }
  0x23   :  { %185 = dma.done.wait [#allocation3], 768  }
  0x24   :  { %186 = vsyncadd [#allocation3], 4294966528 }
  0x25   :  { %187 = dma.done.wait [#allocation6], 768  }
  0x26   :  { %188 = vsyncadd [#allocation6], 4294966528  ;;  %v46_v0 = vld [vmem:[#allocation2] sm:$0xff]  ;;  %v47_v1 = vld [vmem:[#allocation2 + $0x8] sm:$0xff]  ;;  %vm44_vm0 = vcmask 0   ;;  %v195_v29 = vmov 0.0  }
  0x27   :  { %v48_v2 = vld [vmem:[#allocation2 + $0x10] sm:$0xff]  ;;  %v49_v3 = vld [vmem:[#allocation2 + $0x18] sm:$0xff]  ;;  %v50_v4 = vld [vmem:[#allocation2 + $0x20] sm:$0xff]  ;;  %45 = vst.msk [vmem:[#allocation7] sm:$0x1] %vm44_vm0, %v195_v29  ;;  %s196_s6 = smov [#allocation7]  }
  0x28   :  { %v52_v5 = vld [vmem:[#allocation5] sm:$0xff]  ;;  %v53_v6 = vld [vmem:[#allocation5 + $0x8] sm:$0xff]  ;;  %v54_v7 = vld [vmem:[#allocation5 + $0x10] sm:$0xff]  ;;  %s101_s7 = sshll.u32 %s196_s6, 4  ;;  %s102_s7 = int_to_ptr.vmem [resolvable:$true] %s101_s7 }
  0x29   :  { %v55_v8 = vld [vmem:[#allocation5 + $0x18] sm:$0xff]  ;;  %v56_v9 = vld [vmem:[#allocation5 + $0x20] sm:$0xff]  ;;  %v58_v10 = vsub.f32 %v46_v0, %v52_v5  ;;  %v59_v11 = vsub.f32 %v47_v1, %v53_v6  ;;  %v60_v12 = vsub.f32 %v48_v2, %v54_v7  ;;  %v57_v14 = vld [vmem:[#allocation5 + $0x28] sm:$0xff]  ;;  %s163_s8 = scalar_lea.vmem %s102_s7, 16  ;;  %s167_s9 = scalar_lea.vmem %s102_s7, 32 }
  0x2a   :  { %v51_v13 = vld [vmem:[#allocation2 + $0x28] sm:$0xff]  ;;  %v61_v15 = vsub.f32 %v49_v3, %v55_v8  ;;  %v62_v16 = vsub.f32 %v50_v4, %v56_v9  ;;  %p164_p2 = scmp.ne.s32.totalorder %s102_s7, %s163_s8  ;;  %p168_p3 = scmp.lt.s32.totalorder %s102_s7, %s102_s7 }
  0x2b   :  { %v64_v17 = vand.u32 2147483647, %v58_v10  ;;  %v65_v18 = vand.u32 2147483647, %v59_v11  ;;  %v66_v19 = vand.u32 2147483647, %v60_v12  ;;  %v63_v20 = vsub.f32 %v51_v13, %v57_v14  ;;  %p169_p4 = scmp.lt.s32.totalorder %s167_s9, %s163_s8 }
  0x2c   :  { %v67_v21 = vand.u32 2147483647, %v61_v15  ;;  %v68_v23 = vand.u32 2147483647, %v62_v16 }
  0x2d   :  { %v70_v22 = vadd.f32 %v65_v18, %v64_v17  ;;  %v69_v25 = vand.u32 2147483647, %v63_v20  ;;  %p170_p5 = por %p169_p4, %p168_p3 }
  0x2e   :  { %v85_v37 = vld [vmem:[#allocation7] sm:$0x1] }
  0x2f   :  { %v71_v24 = vadd.f32 %v70_v22, %v66_v19  ;;  %p171_p6 = pnand %p170_p5, %p164_p2 }
  0x31   :  { %v72_v26 = vadd.f32 %v71_v24, %v67_v21 }
  0x33   :  { %v73_v27 = vadd.f32 %v72_v26, %v68_v23 }
  0x35   :  { %v74_v28 = vadd.f32 %v73_v27, %v69_v25 }
  0x37   :  { %75 = vadd.xlane.f32.xlu0 %v74_v28 }
  0xc4   :  { %v76_v30 = vpop.xlane.xlu0 %75 }
  0xc5   :  { %v77_v31 = vrot.slane %v76_v30, 4 }
  0xc7   :  { %v78_v32 = vadd.f32 %v77_v31, %v76_v30 }
  0xc9   :  { %v79_v33 = vrot.slane %v78_v32, 2 }
  0xcb   :  { %v80_v34 = vadd.f32 %v79_v33, %v78_v32 }
  0xcd   :  { %v81_v35 = vrot.slane %v80_v34, 1 }
  0xcf   :  { %v82_v36 = vadd.f32 %v81_v35, %v80_v34 }
  0xd1   :  { %111 = vpush %v82_v36 }
 0x102   :  { %s112_s1 = spop %111 }
 0x103   :  { %v84_v38 = vstv %s112_s1 }
 0x104   :  { %v86_v39 = vadd.f32 %v85_v37, %v84_v38 }
 0x106   :  { %88 = vst.msk [vmem:[#allocation7] sm:$0x1] %vm44_vm0, %v86_v39 }
 0x10d   :  { %v92_v40 = vld [vmem:[#allocation7] sm:$0x1] }
 0x10e   :  { %v93_v41 = vmul.f32 0.00016276042, %v92_v40 }
 0x110   :  { %94 = vst.msk [vmem:[#allocation7] sm:$0x1] %vm44_vm0, %v93_v41 }
 0x111   :  { %174 = shalt.err (!%p171_p6)
}
 0x112   :  { %s175_s12 = scalar_lea.hbm %s253_s2, 16 }
 0x113   :  { %p176_p7 = scmp.ne.s32.totalorder %s253_s2, %s175_s12  ;;  %p179_p8 = scmp.lt.u32.totalorder %s175_s12, %s253_s2 }
 0x115   :  { %p181_p9 = pnand %p179_p8, %p176_p7 }
 0x117   :  { %184 = shalt.err (!%p181_p9)
}
 0x118   :  { %104 = dma.vmem_to_hbm [thread:$0]  %s102_s7, 16, %s253_s2, [#allocation4]  }
 0x119   :  { %189 = dma.done.wait [#allocation4], 16  }
 0x11a   :  { %190 = vsyncadd [#allocation4], 4294967280 }
 0x11b   :  { %108 = vsyncpa [#allocation3], 1 }
 0x11c   :  { %109 = vsyncpa [#allocation6], 1 }
 0x11d   :  { %110 = vsyncpa [#allocation4], 1 }

</bundles_post_ra>
